<compile_context>
chip_gen: v5e
topology: v5e:2x2
jax: 0.10.0
libtpu: 0.0.40
codegen_flags: <defaults>
</compile_context>

<pallas_src>
import jax
import jax.numpy as jnp
import numpy as np
from jax.experimental import pallas as pl
from jax.experimental.pallas import tpu as pltpu

# ---- module hyper-parameters (globals in the PyTorch script) ----------------
EMBEDDING = 256   # embedding
HIDDEN = 64       # hidden
N_CLASS = 50      # vocab size (n_class)
MAX_LEN = 8       # max_len
BATCH = 2         # small example batch
N_OUT = 5         # classifier classes
C_PAD = 8         # classifier lane pad: only 5 -> 8, not 5 -> 128


def rnn_kernel(ids_ref, emb_ref, wih_ref, whh_ref, b_ref, w3_ref, bout_ref,
               y_ref, x_scr):
    """Embedding gather + Elman RNN recurrence + final Linear, all in VMEM.

    ids_ref : (S*B,)     int32  SMEM  flattened token ids (row i = (s, b))
    emb_ref : (V, E)     f32    VMEM  embedding table
    wih_ref : (E, H)     bf16   VMEM  W_ih^T
    whh_ref : (H, H)     bf16   VMEM  W_hh^T
    b_ref   : (1, H)     f32    VMEM  b_ih + b_hh (pre-added once)
    w3_ref  : (B, H, C)  bf16   VMEM  classifier weight, C padded 5->8
    bout_ref: (1, C)     f32    VMEM  classifier bias, C padded 5->8
    y_ref   : (S, C)     f32    VMEM  output; caller slices [:, :5]
    x_scr   : (S*B, E)   f32    VMEM  scratch for gathered embedding rows
    """
    S = y_ref.shape[0]
    B = w3_ref.shape[0]
    SB = x_scr.shape[0]

    # (0) Fused embedding gather: dynamic-row loads from the VMEM table,
    #     static-row stores into scratch. SB == 16 -> fully unrolled.
    for i in range(SB):
        x_scr[pl.ds(i, 1), :] = emb_ref[pl.ds(ids_ref[i], 1), :]

    # (1) Input projection hoisted out of the recurrence: one (S*B,E)x(E,H)
    #     MXU push (bf16 operands, f32 accumulation); bias added once here,
    #     not per time step (JAX does not CSE the broadcast).
    xw = jnp.dot(x_scr[...].astype(wih_ref.dtype), wih_ref[...],
                 preferred_element_type=jnp.float32) + b_ref[...]   # (S*B,H) f32

    # (2) Recurrence: only the tiny (B,H)x(H,H) matmul stays on the serial
    #     chain; t=0 skips it since h0 == 0 (exact for nn.RNN's default h0).
    # TODO(synk): for large S replace the unroll + stack with lax.fori_loop
    # writing h_t into a VMEM scratch to keep vreg pressure constant.
    h = jnp.zeros((B, whh_ref.shape[1]), jnp.float32)
    outs = []
    for t in range(S):
        pre = xw[t * B:(t + 1) * B, :]                   # static, tile-aligned
        if t > 0:
            pre = pre + jnp.dot(h.astype(whh_ref.dtype), whh_ref[...],
                                preferred_element_type=jnp.float32)
        h = jnp.tanh(pre)                                # f32 elementwise (v5e-safe)
        outs.append(h)

    # (3) Classifier: y[s,c] = sum_{b,h} out[s,b,h] * W_out[c, b*H+h].
    #     The b-sum is folded into B accumulated 2-D matmuls -> no (B,S,C)
    #     intermediate and no separate cross-sublane reduce.
    hs = jnp.stack(outs, axis=1).astype(w3_ref.dtype)    # (B, S, H) bf16
    acc = jnp.zeros((S, w3_ref.shape[2]), jnp.float32)
    for b in range(B):
        acc = acc + jnp.dot(hs[b], w3_ref[b],
                            preferred_element_type=jnp.float32)
    y_ref[...] = acc + bout_ref[...]


def init_params(key):
    """Deterministic synthetic parameters with the PyTorch module's shapes."""
    ks = jax.random.split(key, 7)
    scale = 0.1
    return {
        # nn.Embedding(n_class, embedding_size)
        "emb":   jax.random.normal(ks[0], (N_CLASS, EMBEDDING), jnp.float32) * scale,
        # nn.RNN(input_size=E, hidden_size=H): weight_ih (H,E), weight_hh (H,H)
        "w_ih":  jax.random.normal(ks[1], (HIDDEN, EMBEDDING), jnp.float32) * scale,
        "w_hh":  jax.random.normal(ks[2], (HIDDEN, HIDDEN), jnp.float32) * scale,
        "b_ih":  jax.random.normal(ks[3], (HIDDEN,), jnp.float32) * scale,
        "b_hh":  jax.random.normal(ks[4], (HIDDEN,), jnp.float32) * scale,
        # nn.Linear(max_len * n_hidden, 5)
        "w_out": jax.random.normal(ks[5], (5, MAX_LEN * HIDDEN), jnp.float32) * scale,
        "b_out": jax.random.normal(ks[6], (5,), jnp.float32) * scale,
    }


def prepare_params(params):
    """One-time layout/dtype preprocessing -> kernel-ready operands.

    Runs once, outside the jitted forward, so the hot path avoids ~6 tiny XLA
    launches + HBM round trips per call (which dominate at these shapes).
    """
    wih_t = params["w_ih"].T.astype(jnp.bfloat16)                    # (E, H)
    whh_t = params["w_hh"].T.astype(jnp.bfloat16)                    # (H, H)
    bias = (params["b_ih"] + params["b_hh"]).reshape(1, HIDDEN).astype(jnp.float32)
    # W_out[c, b*H + h] -> w3[b, h, c], with c padded only 5 -> 8 (bf16, 8 KiB
    # total instead of the previous 5 -> 128 f32 pad at 256 KiB).
    w3 = params["w_out"].reshape(N_OUT, MAX_LEN, HIDDEN)             # (C, B, H)
    w3 = jnp.pad(w3, ((0, C_PAD - N_OUT), (0, 0), (0, 0)))           # (C_PAD, B, H)
    w3 = jnp.transpose(w3, (1, 2, 0)).astype(jnp.bfloat16)           # (B, H, C_PAD)
    bout = jnp.pad(params["b_out"].reshape(1, N_OUT),
                   ((0, 0), (0, C_PAD - N_OUT))).astype(jnp.float32)
    emb = params["emb"].astype(jnp.float32)                          # (V, E)
    return {"emb": emb, "wih_t": wih_t, "whh_t": whh_t, "bias": bias,
            "w3": w3, "bout": bout}


@jax.jit
def rnn_forward(X, prep):
    S, B = X.shape
    # Static slices / flatten in the kernel assume max_len is a multiple of 8
    # sublanes (true here); assert to avoid a silent layout cliff.
    assert B % 8 == 0, "max_len must be a multiple of 8 sublanes"
    ids = X.reshape(S * B).astype(jnp.int32)

    vmem = pl.BlockSpec(memory_space=pltpu.MemorySpace.VMEM)
    smem = pl.BlockSpec(memory_space=pltpu.MemorySpace.SMEM)
    # ~120 KiB of operands -> single grid-less call; fits VMEM on v5e/v6e/v7x.
    # TODO(synk): when batching many independent sequences per call, add a grid
    # over that axis with dimension_semantics=("parallel",) (uses v7x's second
    # TensorCore) and re-derive VMEM budgets against v7x's 64 MiB.
    y_pad = pl.pallas_call(
        rnn_kernel,
        out_shape=jax.ShapeDtypeStruct((S, C_PAD), jnp.float32),
        in_specs=[smem, vmem, vmem, vmem, vmem, vmem, vmem],
        out_specs=vmem,
        scratch_shapes=[pltpu.VMEM((S * B, EMBEDDING), jnp.float32)],
    )(ids, prep["emb"], prep["wih_t"], prep["whh_t"], prep["bias"],
      prep["w3"], prep["bout"])
    return y_pad[:, :N_OUT]


def rnn_forward_ref(X, params):
    """Pure-JAX f32 reference mirroring the PyTorch forward exactly."""
    x = jnp.take(params["emb"], X, axis=0)                # (S, B, E)
    S, B, _ = x.shape
    h = jnp.zeros((B, HIDDEN), jnp.float32)
    outs = []
    for t in range(S):
        h = jnp.tanh(x[t] @ params["w_ih"].T + params["b_ih"]
                     + h @ params["w_hh"].T + params["b_hh"])
        outs.append(h)
    output = jnp.stack(outs, axis=0)                      # (S, B, H)
    flat = output.reshape(-1, MAX_LEN * HIDDEN)
    return flat @ params["w_out"].T + params["b_out"]


if __name__ == "__main__":
    key = jax.random.PRNGKey(0)
    pkey, xkey = jax.random.split(key)
    params = init_params(pkey)
    prep = prepare_params(params)   # one-time; kept out of the jitted hot path

    # X is (batch, max_len) integer token ids, as in the TripAdvisor script.
    X = jax.random.randint(xkey, (BATCH, MAX_LEN), 0, N_CLASS, dtype=jnp.int32)

    y = rnn_forward(X, prep)
    jax.block_until_ready(y)

    y_ref = rnn_forward_ref(X, params)
    # bf16 MXU operands (incl. classifier) -> loosened tolerance vs. f32 ref.
    np.testing.assert_allclose(np.asarray(y), np.asarray(y_ref),
                               rtol=3e-2, atol=3e-2)
    assert y.shape == (BATCH, 5)
    print("KERNEL_OK")
</pallas_src>

<mosaic_0001>
module attributes {stable_mosaic.version = 11 : i64} {
  func.func @rnn_kernel(%arg0: memref<16xi32, #tpu.memory_space<smem>>, %arg1: memref<50x256xf32, #tpu.memory_space<vmem>>, %arg2: memref<256x64xbf16, #tpu.memory_space<vmem>>, %arg3: memref<64x64xbf16, #tpu.memory_space<vmem>>, %arg4: memref<1x64xf32, #tpu.memory_space<vmem>>, %arg5: memref<8x64x8xbf16, #tpu.memory_space<vmem>>, %arg6: memref<1x8xf32, #tpu.memory_space<vmem>>, %arg7: memref<2x8xf32, #tpu.memory_space<vmem>>, %arg8: memref<16x256xf32, #tpu.memory_space<vmem>>) attributes {dimension_semantics = [], scalar_prefetch = 0 : i64, scratch_operands = 1 : i64, tpu.core_type = #tpu.core_type<tc>} {
    %c0 = arith.constant 0 : index
    %0 = memref.load %arg0[%c0] : memref<16xi32, #tpu.memory_space<smem>>
    %1 = arith.index_cast %0 : i32 to index
    %c0_0 = arith.constant 0 : index
    %2 = vector.load %arg1[%1, %c0_0] : memref<50x256xf32, #tpu.memory_space<vmem>>, vector<1x256xf32>
    %c0_1 = arith.constant 0 : index
    %c0_2 = arith.constant 0 : index
    %3 = vector.load %arg8[%c0_1, %c0_2] : memref<16x256xf32, #tpu.memory_space<vmem>>, vector<1x256xf32>
    tpu.vector_store %arg8[%c0_1, %c0_2], %2 {strides = array<i32>} : memref<16x256xf32, #tpu.memory_space<vmem>>, vector<1x256xf32>,
    %c1 = arith.constant 1 : index
    %4 = memref.load %arg0[%c1] : memref<16xi32, #tpu.memory_space<smem>>
    %5 = arith.index_cast %4 : i32 to index
    %c0_3 = arith.constant 0 : index
    %6 = vector.load %arg1[%5, %c0_3] : memref<50x256xf32, #tpu.memory_space<vmem>>, vector<1x256xf32>
    %c1_4 = arith.constant 1 : index
    %c0_5 = arith.constant 0 : index
    %7 = vector.load %arg8[%c1_4, %c0_5] : memref<16x256xf32, #tpu.memory_space<vmem>>, vector<1x256xf32>
    tpu.vector_store %arg8[%c1_4, %c0_5], %6 {strides = array<i32>} : memref<16x256xf32, #tpu.memory_space<vmem>>, vector<1x256xf32>,
    %c2 = arith.constant 2 : index
    %8 = memref.load %arg0[%c2] : memref<16xi32, #tpu.memory_space<smem>>
    %9 = arith.index_cast %8 : i32 to index
    %c0_6 = arith.constant 0 : index
    %10 = vector.load %arg1[%9, %c0_6] : memref<50x256xf32, #tpu.memory_space<vmem>>, vector<1x256xf32>
    %c2_7 = arith.constant 2 : index
    %c0_8 = arith.constant 0 : index
    %11 = vector.load %arg8[%c2_7, %c0_8] : memref<16x256xf32, #tpu.memory_space<vmem>>, vector<1x256xf32>
    tpu.vector_store %arg8[%c2_7, %c0_8], %10 {strides = array<i32>} : memref<16x256xf32, #tpu.memory_space<vmem>>, vector<1x256xf32>,
    %c3 = arith.constant 3 : index
    %12 = memref.load %arg0[%c3] : memref<16xi32, #tpu.memory_space<smem>>
    %13 = arith.index_cast %12 : i32 to index
    %c0_9 = arith.constant 0 : index
    %14 = vector.load %arg1[%13, %c0_9] : memref<50x256xf32, #tpu.memory_space<vmem>>, vector<1x256xf32>
    %c3_10 = arith.constant 3 : index
    %c0_11 = arith.constant 0 : index
    %15 = vector.load %arg8[%c3_10, %c0_11] : memref<16x256xf32, #tpu.memory_space<vmem>>, vector<1x256xf32>
    tpu.vector_store %arg8[%c3_10, %c0_11], %14 {strides = array<i32>} : memref<16x256xf32, #tpu.memory_space<vmem>>, vector<1x256xf32>,
    %c4 = arith.constant 4 : index
    %16 = memref.load %arg0[%c4] : memref<16xi32, #tpu.memory_space<smem>>
    %17 = arith.index_cast %16 : i32 to index
    %c0_12 = arith.constant 0 : index
    %18 = vector.load %arg1[%17, %c0_12] : memref<50x256xf32, #tpu.memory_space<vmem>>, vector<1x256xf32>
    %c4_13 = arith.constant 4 : index
    %c0_14 = arith.constant 0 : index
    %19 = vector.load %arg8[%c4_13, %c0_14] : memref<16x256xf32, #tpu.memory_space<vmem>>, vector<1x256xf32>
    tpu.vector_store %arg8[%c4_13, %c0_14], %18 {strides = array<i32>} : memref<16x256xf32, #tpu.memory_space<vmem>>, vector<1x256xf32>,
    %c5 = arith.constant 5 : index
    %20 = memref.load %arg0[%c5] : memref<16xi32, #tpu.memory_space<smem>>
    %21 = arith.index_cast %20 : i32 to index
    %c0_15 = arith.constant 0 : index
    %22 = vector.load %arg1[%21, %c0_15] : memref<50x256xf32, #tpu.memory_space<vmem>>, vector<1x256xf32>
    %c5_16 = arith.constant 5 : index
    %c0_17 = arith.constant 0 : index
    %23 = vector.load %arg8[%c5_16, %c0_17] : memref<16x256xf32, #tpu.memory_space<vmem>>, vector<1x256xf32>
    tpu.vector_store %arg8[%c5_16, %c0_17], %22 {strides = array<i32>} : memref<16x256xf32, #tpu.memory_space<vmem>>, vector<1x256xf32>,
    %c6 = arith.constant 6 : index
    %24 = memref.load %arg0[%c6] : memref<16xi32, #tpu.memory_space<smem>>
    %25 = arith.index_cast %24 : i32 to index
    %c0_18 = arith.constant 0 : index
    %26 = vector.load %arg1[%25, %c0_18] : memref<50x256xf32, #tpu.memory_space<vmem>>, vector<1x256xf32>
    %c6_19 = arith.constant 6 : index
    %c0_20 = arith.constant 0 : index
    %27 = vector.load %arg8[%c6_19, %c0_20] : memref<16x256xf32, #tpu.memory_space<vmem>>, vector<1x256xf32>
    tpu.vector_store %arg8[%c6_19, %c0_20], %26 {strides = array<i32>} : memref<16x256xf32, #tpu.memory_space<vmem>>, vector<1x256xf32>,
    %c7 = arith.constant 7 : index
    %28 = memref.load %arg0[%c7] : memref<16xi32, #tpu.memory_space<smem>>
    %29 = arith.index_cast %28 : i32 to index
    %c0_21 = arith.constant 0 : index
    %30 = vector.load %arg1[%29, %c0_21] : memref<50x256xf32, #tpu.memory_space<vmem>>, vector<1x256xf32>
    %c7_22 = arith.constant 7 : index
    %c0_23 = arith.constant 0 : index
    %31 = vector.load %arg8[%c7_22, %c0_23] : memref<16x256xf32, #tpu.memory_space<vmem>>, vector<1x256xf32>
    tpu.vector_store %arg8[%c7_22, %c0_23], %30 {strides = array<i32>} : memref<16x256xf32, #tpu.memory_space<vmem>>, vector<1x256xf32>,
    %c8 = arith.constant 8 : index
    %32 = memref.load %arg0[%c8] : memref<16xi32, #tpu.memory_space<smem>>
    %33 = arith.index_cast %32 : i32 to index
    %c0_24 = arith.constant 0 : index
    %34 = vector.load %arg1[%33, %c0_24] : memref<50x256xf32, #tpu.memory_space<vmem>>, vector<1x256xf32>
    %c8_25 = arith.constant 8 : index
    %c0_26 = arith.constant 0 : index
    %35 = vector.load %arg8[%c8_25, %c0_26] : memref<16x256xf32, #tpu.memory_space<vmem>>, vector<1x256xf32>
    tpu.vector_store %arg8[%c8_25, %c0_26], %34 {strides = array<i32>} : memref<16x256xf32, #tpu.memory_space<vmem>>, vector<1x256xf32>,
    %c9 = arith.constant 9 : index
    %36 = memref.load %arg0[%c9] : memref<16xi32, #tpu.memory_space<smem>>
    %37 = arith.index_cast %36 : i32 to index
    %c0_27 = arith.constant 0 : index
    %38 = vector.load %arg1[%37, %c0_27] : memref<50x256xf32, #tpu.memory_space<vmem>>, vector<1x256xf32>
    %c9_28 = arith.constant 9 : index
    %c0_29 = arith.constant 0 : index
    %39 = vector.load %arg8[%c9_28, %c0_29] : memref<16x256xf32, #tpu.memory_space<vmem>>, vector<1x256xf32>
    tpu.vector_store %arg8[%c9_28, %c0_29], %38 {strides = array<i32>} : memref<16x256xf32, #tpu.memory_space<vmem>>, vector<1x256xf32>,
    %c10 = arith.constant 10 : index
    %40 = memref.load %arg0[%c10] : memref<16xi32, #tpu.memory_space<smem>>
    %41 = arith.index_cast %40 : i32 to index
    %c0_30 = arith.constant 0 : index
    %42 = vector.load %arg1[%41, %c0_30] : memref<50x256xf32, #tpu.memory_space<vmem>>, vector<1x256xf32>
    %c10_31 = arith.constant 10 : index
    %c0_32 = arith.constant 0 : index
    %43 = vector.load %arg8[%c10_31, %c0_32] : memref<16x256xf32, #tpu.memory_space<vmem>>, vector<1x256xf32>
    tpu.vector_store %arg8[%c10_31, %c0_32], %42 {strides = array<i32>} : memref<16x256xf32, #tpu.memory_space<vmem>>, vector<1x256xf32>,
    %c11 = arith.constant 11 : index
    %44 = memref.load %arg0[%c11] : memref<16xi32, #tpu.memory_space<smem>>
    %45 = arith.index_cast %44 : i32 to index
    %c0_33 = arith.constant 0 : index
    %46 = vector.load %arg1[%45, %c0_33] : memref<50x256xf32, #tpu.memory_space<vmem>>, vector<1x256xf32>
    %c11_34 = arith.constant 11 : index
    %c0_35 = arith.constant 0 : index
    %47 = vector.load %arg8[%c11_34, %c0_35] : memref<16x256xf32, #tpu.memory_space<vmem>>, vector<1x256xf32>
    tpu.vector_store %arg8[%c11_34, %c0_35], %46 {strides = array<i32>} : memref<16x256xf32, #tpu.memory_space<vmem>>, vector<1x256xf32>,
    %c12 = arith.constant 12 : index
    %48 = memref.load %arg0[%c12] : memref<16xi32, #tpu.memory_space<smem>>
    %49 = arith.index_cast %48 : i32 to index
    %c0_36 = arith.constant 0 : index
    %50 = vector.load %arg1[%49, %c0_36] : memref<50x256xf32, #tpu.memory_space<vmem>>, vector<1x256xf32>
    %c12_37 = arith.constant 12 : index
    %c0_38 = arith.constant 0 : index
    %51 = vector.load %arg8[%c12_37, %c0_38] : memref<16x256xf32, #tpu.memory_space<vmem>>, vector<1x256xf32>
    tpu.vector_store %arg8[%c12_37, %c0_38], %50 {strides = array<i32>} : memref<16x256xf32, #tpu.memory_space<vmem>>, vector<1x256xf32>,
    %c13 = arith.constant 13 : index
    %52 = memref.load %arg0[%c13] : memref<16xi32, #tpu.memory_space<smem>>
    %53 = arith.index_cast %52 : i32 to index
    %c0_39 = arith.constant 0 : index
    %54 = vector.load %arg1[%53, %c0_39] : memref<50x256xf32, #tpu.memory_space<vmem>>, vector<1x256xf32>
    %c13_40 = arith.constant 13 : index
    %c0_41 = arith.constant 0 : index
    %55 = vector.load %arg8[%c13_40, %c0_41] : memref<16x256xf32, #tpu.memory_space<vmem>>, vector<1x256xf32>
    tpu.vector_store %arg8[%c13_40, %c0_41], %54 {strides = array<i32>} : memref<16x256xf32, #tpu.memory_space<vmem>>, vector<1x256xf32>,
    %c14 = arith.constant 14 : index
    %56 = memref.load %arg0[%c14] : memref<16xi32, #tpu.memory_space<smem>>
    %57 = arith.index_cast %56 : i32 to index
    %c0_42 = arith.constant 0 : index
    %58 = vector.load %arg1[%57, %c0_42] : memref<50x256xf32, #tpu.memory_space<vmem>>, vector<1x256xf32>
    %c14_43 = arith.constant 14 : index
    %c0_44 = arith.constant 0 : index
    %59 = vector.load %arg8[%c14_43, %c0_44] : memref<16x256xf32, #tpu.memory_space<vmem>>, vector<1x256xf32>
    tpu.vector_store %arg8[%c14_43, %c0_44], %58 {strides = array<i32>} : memref<16x256xf32, #tpu.memory_space<vmem>>, vector<1x256xf32>,
    %c15 = arith.constant 15 : index
    %60 = memref.load %arg0[%c15] : memref<16xi32, #tpu.memory_space<smem>>
    %61 = arith.index_cast %60 : i32 to index
    %c0_45 = arith.constant 0 : index
    %62 = vector.load %arg1[%61, %c0_45] : memref<50x256xf32, #tpu.memory_space<vmem>>, vector<1x256xf32>
    %c15_46 = arith.constant 15 : index
    %c0_47 = arith.constant 0 : index
    %63 = vector.load %arg8[%c15_46, %c0_47] : memref<16x256xf32, #tpu.memory_space<vmem>>, vector<1x256xf32>
    tpu.vector_store %arg8[%c15_46, %c0_47], %62 {strides = array<i32>} : memref<16x256xf32, #tpu.memory_space<vmem>>, vector<1x256xf32>,
    %c0_48 = arith.constant 0 : index
    %c0_49 = arith.constant 0 : index
    %64 = vector.load %arg8[%c0_48, %c0_49] : memref<16x256xf32, #tpu.memory_space<vmem>>, vector<16x256xf32>
    %65 = arith.truncf %64 : vector<16x256xf32> to vector<16x256xbf16>
    %c0_50 = arith.constant 0 : index
    %c0_51 = arith.constant 0 : index
    %66 = vector.load %arg2[%c0_50, %c0_51] : memref<256x64xbf16, #tpu.memory_space<vmem>>, vector<256x64xbf16>
    %cst = arith.constant dense<0.000000e+00> : vector<16x64xf32>
    %67 = tpu.matmul %65, %66, %cst {dimension_numbers = #tpu.dot_dimension_numbers<[1], [0], [0], [1], [0, 0, 1, 1], [], []>} : vector<16x256xbf16>, vector<256x64xbf16>, vector<16x64xf32> -> vector<16x64xf32>
    %c0_52 = arith.constant 0 : index
    %c0_53 = arith.constant 0 : index
    %68 = vector.load %arg4[%c0_52, %c0_53] : memref<1x64xf32, #tpu.memory_space<vmem>>, vector<1x64xf32>
    %69 = vector.broadcast %68 : vector<1x64xf32> to vector<16x64xf32>
    %70 = arith.addf %67, %69 : vector<16x64xf32>
    %71 = vector.extract_strided_slice %70 {offsets = [0, 0], sizes = [8, 64], strides = [1, 1]} : vector<16x64xf32> to vector<8x64xf32>
    %72 = math.tanh %71 : vector<8x64xf32>
    %73 = vector.extract_strided_slice %70 {offsets = [8, 0], sizes = [8, 64], strides = [1, 1]} : vector<16x64xf32> to vector<8x64xf32>
    %74 = arith.truncf %72 : vector<8x64xf32> to vector<8x64xbf16>
    %c0_54 = arith.constant 0 : index
    %c0_55 = arith.constant 0 : index
    %75 = vector.load %arg3[%c0_54, %c0_55] : memref<64x64xbf16, #tpu.memory_space<vmem>>, vector<64x64xbf16>
    %cst_56 = arith.constant dense<0.000000e+00> : vector<8x64xf32>
    %76 = tpu.matmul %74, %75, %cst_56 {dimension_numbers = #tpu.dot_dimension_numbers<[1], [0], [0], [1], [0, 0, 1, 1], [], []>} : vector<8x64xbf16>, vector<64x64xbf16>, vector<8x64xf32> -> vector<8x64xf32>
    %77 = arith.addf %73, %76 : vector<8x64xf32>
    %78 = math.tanh %77 : vector<8x64xf32>
    %79 = vector.shape_cast %72 : vector<8x64xf32> to vector<8x1x64xf32>
    %80 = vector.shape_cast %78 : vector<8x64xf32> to vector<8x1x64xf32>
    %81 = tpu.concatenate %79, %80 in 1 : vector<8x1x64xf32>, vector<8x1x64xf32> -> vector<8x2x64xf32>
    %82 = arith.truncf %81 : vector<8x2x64xf32> to vector<8x2x64xbf16>
    %cst_57 = arith.constant 0.000000e+00 : f32
    %83 = vector.broadcast %cst_57 : f32 to vector<2x8xf32>
    %84 = vector.extract_strided_slice %82 {offsets = [0, 0, 0], sizes = [1, 2, 64], strides = [1, 1, 1]} : vector<8x2x64xbf16> to vector<1x2x64xbf16>
    %85 = vector.shape_cast %84 : vector<1x2x64xbf16> to vector<2x64xbf16>
    %c0_58 = arith.constant 0 : index
    %c0_59 = arith.constant 0 : index
    %c0_60 = arith.constant 0 : index
    %86 = vector.load %arg5[%c0_58, %c0_59, %c0_60] : memref<8x64x8xbf16, #tpu.memory_space<vmem>>, vector<1x64x8xbf16>
    %87 = vector.shape_cast %86 : vector<1x64x8xbf16> to vector<64x8xbf16>
    %cst_61 = arith.constant dense<0.000000e+00> : vector<2x8xf32>
    %88 = tpu.matmul %85, %87, %cst_61 {dimension_numbers = #tpu.dot_dimension_numbers<[1], [0], [0], [1], [0, 0, 1, 1], [], []>} : vector<2x64xbf16>, vector<64x8xbf16>, vector<2x8xf32> -> vector<2x8xf32>
    %89 = arith.addf %83, %88 : vector<2x8xf32>
    %90 = vector.extract_strided_slice %82 {offsets = [1, 0, 0], sizes = [1, 2, 64], strides = [1, 1, 1]} : vector<8x2x64xbf16> to vector<1x2x64xbf16>
    %91 = vector.shape_cast %90 : vector<1x2x64xbf16> to vector<2x64xbf16>
    %c1_62 = arith.constant 1 : index
    %c0_63 = arith.constant 0 : index
    %c0_64 = arith.constant 0 : index
    %92 = vector.load %arg5[%c1_62, %c0_63, %c0_64] : memref<8x64x8xbf16, #tpu.memory_space<vmem>>, vector<1x64x8xbf16>
    %93 = vector.shape_cast %92 : vector<1x64x8xbf16> to vector<64x8xbf16>
    %cst_65 = arith.constant dense<0.000000e+00> : vector<2x8xf32>
    %94 = tpu.matmul %91, %93, %cst_65 {dimension_numbers = #tpu.dot_dimension_numbers<[1], [0], [0], [1], [0, 0, 1, 1], [], []>} : vector<2x64xbf16>, vector<64x8xbf16>, vector<2x8xf32> -> vector<2x8xf32>
    %95 = arith.addf %89, %94 : vector<2x8xf32>
    %96 = vector.extract_strided_slice %82 {offsets = [2, 0, 0], sizes = [1, 2, 64], strides = [1, 1, 1]} : vector<8x2x64xbf16> to vector<1x2x64xbf16>
    %97 = vector.shape_cast %96 : vector<1x2x64xbf16> to vector<2x64xbf16>
    %c2_66 = arith.constant 2 : index
    %c0_67 = arith.constant 0 : index
    %c0_68 = arith.constant 0 : index
    %98 = vector.load %arg5[%c2_66, %c0_67, %c0_68] : memref<8x64x8xbf16, #tpu.memory_space<vmem>>, vector<1x64x8xbf16>
    %99 = vector.shape_cast %98 : vector<1x64x8xbf16> to vector<64x8xbf16>
    %cst_69 = arith.constant dense<0.000000e+00> : vector<2x8xf32>
    %100 = tpu.matmul %97, %99, %cst_69 {dimension_numbers = #tpu.dot_dimension_numbers<[1], [0], [0], [1], [0, 0, 1, 1], [], []>} : vector<2x64xbf16>, vector<64x8xbf16>, vector<2x8xf32> -> vector<2x8xf32>
    %101 = arith.addf %95, %100 : vector<2x8xf32>
    %102 = vector.extract_strided_slice %82 {offsets = [3, 0, 0], sizes = [1, 2, 64], strides = [1, 1, 1]} : vector<8x2x64xbf16> to vector<1x2x64xbf16>
    %103 = vector.shape_cast %102 : vector<1x2x64xbf16> to vector<2x64xbf16>
    %c3_70 = arith.constant 3 : index
    %c0_71 = arith.constant 0 : index
    %c0_72 = arith.constant 0 : index
    %104 = vector.load %arg5[%c3_70, %c0_71, %c0_72] : memref<8x64x8xbf16, #tpu.memory_space<vmem>>, vector<1x64x8xbf16>
    %105 = vector.shape_cast %104 : vector<1x64x8xbf16> to vector<64x8xbf16>
    %cst_73 = arith.constant dense<0.000000e+00> : vector<2x8xf32>
    %106 = tpu.matmul %103, %105, %cst_73 {dimension_numbers = #tpu.dot_dimension_numbers<[1], [0], [0], [1], [0, 0, 1, 1], [], []>} : vector<2x64xbf16>, vector<64x8xbf16>, vector<2x8xf32> -> vector<2x8xf32>
    %107 = arith.addf %101, %106 : vector<2x8xf32>
    %108 = vector.extract_strided_slice %82 {offsets = [4, 0, 0], sizes = [1, 2, 64], strides = [1, 1, 1]} : vector<8x2x64xbf16> to vector<1x2x64xbf16>
    %109 = vector.shape_cast %108 : vector<1x2x64xbf16> to vector<2x64xbf16>
    %c4_74 = arith.constant 4 : index
    %c0_75 = arith.constant 0 : index
    %c0_76 = arith.constant 0 : index
    %110 = vector.load %arg5[%c4_74, %c0_75, %c0_76] : memref<8x64x8xbf16, #tpu.memory_space<vmem>>, vector<1x64x8xbf16>
    %111 = vector.shape_cast %110 : vector<1x64x8xbf16> to vector<64x8xbf16>
    %cst_77 = arith.constant dense<0.000000e+00> : vector<2x8xf32>
    %112 = tpu.matmul %109, %111, %cst_77 {dimension_numbers = #tpu.dot_dimension_numbers<[1], [0], [0], [1], [0, 0, 1, 1], [], []>} : vector<2x64xbf16>, vector<64x8xbf16>, vector<2x8xf32> -> vector<2x8xf32>
    %113 = arith.addf %107, %112 : vector<2x8xf32>
    %114 = vector.extract_strided_slice %82 {offsets = [5, 0, 0], sizes = [1, 2, 64], strides = [1, 1, 1]} : vector<8x2x64xbf16> to vector<1x2x64xbf16>
    %115 = vector.shape_cast %114 : vector<1x2x64xbf16> to vector<2x64xbf16>
    %c5_78 = arith.constant 5 : index
    %c0_79 = arith.constant 0 : index
    %c0_80 = arith.constant 0 : index
    %116 = vector.load %arg5[%c5_78, %c0_79, %c0_80] : memref<8x64x8xbf16, #tpu.memory_space<vmem>>, vector<1x64x8xbf16>
    %117 = vector.shape_cast %116 : vector<1x64x8xbf16> to vector<64x8xbf16>
    %cst_81 = arith.constant dense<0.000000e+00> : vector<2x8xf32>
    %118 = tpu.matmul %115, %117, %cst_81 {dimension_numbers = #tpu.dot_dimension_numbers<[1], [0], [0], [1], [0, 0, 1, 1], [], []>} : vector<2x64xbf16>, vector<64x8xbf16>, vector<2x8xf32> -> vector<2x8xf32>
    %119 = arith.addf %113, %118 : vector<2x8xf32>
    %120 = vector.extract_strided_slice %82 {offsets = [6, 0, 0], sizes = [1, 2, 64], strides = [1, 1, 1]} : vector<8x2x64xbf16> to vector<1x2x64xbf16>
    %121 = vector.shape_cast %120 : vector<1x2x64xbf16> to vector<2x64xbf16>
    %c6_82 = arith.constant 6 : index
    %c0_83 = arith.constant 0 : index
    %c0_84 = arith.constant 0 : index
    %122 = vector.load %arg5[%c6_82, %c0_83, %c0_84] : memref<8x64x8xbf16, #tpu.memory_space<vmem>>, vector<1x64x8xbf16>
    %123 = vector.shape_cast %122 : vector<1x64x8xbf16> to vector<64x8xbf16>
    %cst_85 = arith.constant dense<0.000000e+00> : vector<2x8xf32>
    %124 = tpu.matmul %121, %123, %cst_85 {dimension_numbers = #tpu.dot_dimension_numbers<[1], [0], [0], [1], [0, 0, 1, 1], [], []>} : vector<2x64xbf16>, vector<64x8xbf16>, vector<2x8xf32> -> vector<2x8xf32>
    %125 = arith.addf %119, %124 : vector<2x8xf32>
    %126 = vector.extract_strided_slice %82 {offsets = [7, 0, 0], sizes = [1, 2, 64], strides = [1, 1, 1]} : vector<8x2x64xbf16> to vector<1x2x64xbf16>
    %127 = vector.shape_cast %126 : vector<1x2x64xbf16> to vector<2x64xbf16>
    %c7_86 = arith.constant 7 : index
    %c0_87 = arith.constant 0 : index
    %c0_88 = arith.constant 0 : index
    %128 = vector.load %arg5[%c7_86, %c0_87, %c0_88] : memref<8x64x8xbf16, #tpu.memory_space<vmem>>, vector<1x64x8xbf16>
    %129 = vector.shape_cast %128 : vector<1x64x8xbf16> to vector<64x8xbf16>
    %cst_89 = arith.constant dense<0.000000e+00> : vector<2x8xf32>
    %130 = tpu.matmul %127, %129, %cst_89 {dimension_numbers = #tpu.dot_dimension_numbers<[1], [0], [0], [1], [0, 0, 1, 1], [], []>} : vector<2x64xbf16>, vector<64x8xbf16>, vector<2x8xf32> -> vector<2x8xf32>
    %131 = arith.addf %125, %130 : vector<2x8xf32>
    %c0_90 = arith.constant 0 : index
    %c0_91 = arith.constant 0 : index
    %132 = vector.load %arg6[%c0_90, %c0_91] : memref<1x8xf32, #tpu.memory_space<vmem>>, vector<1x8xf32>
    %133 = vector.broadcast %132 : vector<1x8xf32> to vector<2x8xf32>
    %134 = arith.addf %131, %133 : vector<2x8xf32>
    %c0_92 = arith.constant 0 : index
    %c0_93 = arith.constant 0 : index
    %135 = vector.load %arg7[%c0_92, %c0_93] : memref<2x8xf32, #tpu.memory_space<vmem>>, vector<2x8xf32>
    tpu.vector_store %arg7[%c0_92, %c0_93], %134 {strides = array<i32>} : memref<2x8xf32, #tpu.memory_space<vmem>>, vector<2x8xf32>,
    return
  }
}

</mosaic_0001>

<bundles_post_ra>
// kernel: rnn_forward.1
= control target key start
LH: loop header
LB: loop body
LE: loop exit
PB: predicated region body
PF: predicated region fallthrough
CT: control target
= control target key end

     0   :  { %12 = vsyncpa [#allocation5], 0  ;;  %s1791_s0 = inlined_call_operand.vmem [shape: s32[16], index: 0, kind: input, shape index: {}]   ;;  %s1792_s1 = inlined_call_operand.vmem [shape: f32[50,256], index: 1, kind: input, shape index: {}]   ;;  %s1793_s2 = inlined_call_operand.vmem [shape: bf16[256,64], index: 2, kind: input, shape index: {}]   ;;  %s1794_s3 = inlined_call_operand.vmem [shape: bf16[64,64], index: 3, kind: input, shape index: {}]   ;;  %s1795_s4 = inlined_call_operand.vmem [shape: f32[1,64], index: 4, kind: input, shape index: {}]   ;;  %s1796_s5 = inlined_call_operand.vmem [shape: bf16[8,64,8], index: 5, kind: input, shape index: {}]   ;;  %s1797_s6 = inlined_call_operand.vmem [shape: f32[1,8], index: 6, kind: input, shape index: {}]   ;;  %s1798_s7 = inlined_call_operand.hbm [shape: f32[2,8], index: 7, kind: output, shape index: {}]  }
   0x1   :  { %13 = vsyncpa [#allocation4], 0  ;;  %s19_s26 = sshll.u32 %s1791_s0, 4  ;;  %s1432_s27 = smov [#allocation3]   ;;  %s20_s26 = int_to_ptr.vmem [resolvable:$true] %s19_s26 }
   0x2   :  { %22 = dma.vmem_to_smem %s20_s26, 16, %s1432_s27, [#allocation5]  }
   0x3   :  { %1428 = dma.done.wait [#allocation5], 16  }
   0x4   :  { %1429 = vsyncadd [#allocation5], 4294967280 }
   0x5   :  { %39 = sfence }
   0x6   :  { %v1339_v0 = vld [vmem:[%s1793_s2 + $0x38] sm:$0xff]  ;;  %s41_s9 = sld [smem:[#allocation3]]  ;;  %v1338_v2 = vld [vmem:[%s1793_s2 + $0x30] sm:$0xff]  ;;  %v51_v4 = vlaneseq  ;;  %v1337_v5 = vld [vmem:[%s1793_s2 + $0x28] sm:$0xff]  ;;  %vm452_vm1 = vcmask 523264   ;;  %vm510_vm2 = vcmask 1040384  }
   0x7   :  { %v1347_v1 = vld [vmem:[%s1793_s2 + $0x78] sm:$0xff]  ;;  %s1483_s10 = sld [smem:[#allocation3 + $0x1]]  ;;  %390 = vmatpush.bf16.msra.mxu0 %v1339_v0  ;;  %v1346_v3 = vld [vmem:[%s1793_s2 + $0x70] sm:$0xff]  ;;  %v1345_v6 = vld [vmem:[%s1793_s2 + $0x68] sm:$0xff]  ;;  %vm929_vm3 = vcmask 58368  }
   0x8   :  { %404 = vmatpush.bf16.msra.mxu1 %v1347_v1  ;;  %s1491_s14 = sld [smem:[#allocation3 + $0x2]]  ;;  %vm1506_vm0 = vcmp.lt.s32.totalorder %v51_v4, 256  ;;  %v1336_v8 = vld [vmem:[%s1793_s2 + $0x20] sm:$0xff]  ;;  %v1335_v12 = vld [vmem:[%s1793_s2 + $0x18] sm:$0xff]  ;;  %v1334_v16 = vld [vmem:[%s1793_s2 + $0x10] sm:$0xff] }
   0x9   :  { %s1493_s15 = sld [smem:[#allocation3 + $0x3]]  ;;  %v1344_v9 = vld [vmem:[%s1793_s2 + $0x60] sm:$0xff]  ;;  %v1343_v13 = vld [vmem:[%s1793_s2 + $0x58] sm:$0xff]  ;;  %v1342_v17 = vld [vmem:[%s1793_s2 + $0x50] sm:$0xff] }
   0xa   :  { %s1495_s16 = sld [smem:[#allocation3 + $0x4]]  ;;  %v1333_v19 = vld [vmem:[%s1793_s2 + $0x8] sm:$0xff]  ;;  %v1332_v22 = vld [vmem:[%s1793_s2] sm:$0xff]  ;;  %v1351_v27 = vld [vmem:[%s1794_s3 + $0x18] sm:$0xff] }
   0xb   :  { %s1497_s17 = sld [smem:[#allocation3 + $0x5]]  ;;  %391 = vmatpush.bf16.msra.mxu0 %v1338_v2  ;;  %v1341_v20 = vld [vmem:[%s1793_s2 + $0x48] sm:$0xff]  ;;  %v1340_v23 = vld [vmem:[%s1793_s2 + $0x40] sm:$0xff]  ;;  %460 = vmatpush.bf16.msra.mxu2 %v1351_v27  ;;  %v1350_v41 = vld [vmem:[%s1794_s3 + $0x10] sm:$0xff] }
   0xc   :  { %405 = vmatpush.bf16.msra.mxu1 %v1346_v3  ;;  %s42_s22 = sshra.s32 %s41_s9, 3  ;;  %s45_s23 = sand.u32 7, %s41_s9  ;;  %v1349_v42 = vld [vmem:[%s1794_s3 + $0x8] sm:$0xff]  ;;  %v1348_v43 = vld [vmem:[%s1794_s3] sm:$0xff]  ;;  %v1355_v51 = vld [vmem:[%s1796_s5 + $0x18] sm:$0xff] }
   0xd   :  { %s1316_s24 = sshll.u32 %s42_s22, 4  ;;  %s58_s25 = sshra.s32 %s1483_s10, 3  ;;  %v1386_v44 = vld [vmem:[%s1795_s4] ss:$0 sm:$0xff]  ;;  %v1359_v52 = vld [vmem:[%s1796_s5 + $0x38] sm:$0xff]  ;;  %v1354_v55 = vld [vmem:[%s1796_s5 + $0x10] sm:$0xff] }
   0xe   :  { %s48_s26 = sadd.s32 %s1316_s24, %s45_s23  ;;  %s61_s27 = sand.u32 7, %s1483_s10  ;;  %v1367_v53 = vld [vmem:[%s1796_s5 + $0x78] sm:$0xff]  ;;  %575 = vmatpush.bf16.msra.mxu3 %v1359_v52  ;;  %v1358_v56 = vld [vmem:[%s1796_s5 + $0x30] sm:$0xff]  ;;  %v1353_v59 = vld [vmem:[%s1796_s5 + $0x8] sm:$0xff] }
   0xf   :  { %s49_s30 = scalar_lea.vmem %s1792_s1, %s48_s26  ;;  %s1317_s8 = sshll.u32 %s58_s25, 4  ;;  %392 = vmatpush.bf16.msra.mxu0 %v1337_v5  ;;  %461 = vmatpush.bf16.msra.mxu2 %v1350_v41  ;;  %v1371_v54 = vld [vmem:[%s1796_s5 + $0x98] sm:$0xff]  ;;  %v1366_v57 = vld [vmem:[%s1796_s5 + $0x70] sm:$0xff]  ;;  %v1357_v60 = vld [vmem:[%s1796_s5 + $0x28] sm:$0xff] }
  0x10   :  { %406 = vmatpush.bf16.msra.mxu1 %v1345_v6  ;;  %v50_v10 = vld [vmem:[%s49_s30] ss:$8 sm:$0x3]  ;;  %s64_s13 = sadd.s32 %s1317_s8, %s61_s27  ;;  %s71_s18 = sshra.s32 %s1491_s14, 3  ;;  %v1370_v58 = vld [vmem:[%s1796_s5 + $0x90] sm:$0xff]  ;;  %v1375_v3 = vld [vmem:[%s1796_s5 + $0xb8] sm:$0xff] }
  0x11   :  { %55 = vst.msk [vmem:[#allocation2] ss:$8 sm:$0x3] %vm1506_vm0, %v50_v10  ;;  %s65_s20 = scalar_lea.vmem %s1792_s1, %s64_s13  ;;  %s74_s21 = sand.u32 7, %s1491_s14  ;;  %v1365_v61 = vld [vmem:[%s1796_s5 + $0x68] sm:$0xff]  ;;  %v1352_v63 = vld [vmem:[%s1796_s5] sm:$0xff] }
  0x12   :  { %v66_v11 = vld [vmem:[%s65_s20] ss:$8 sm:$0x3]  ;;  %s1318_s22 = sshll.u32 %s71_s18, 4  ;;  %s84_s23 = sshra.s32 %s1493_s15, 3  ;;  %576 = vmatpush.bf16.msra.mxu3 %v1358_v56  ;;  %v1363_v4 = vld [vmem:[%s1796_s5 + $0x58] sm:$0xff] }
  0x13   :  { %68 = vst.msk [vmem:[#allocation2 + $0x1] ss:$8 sm:$0x3] %vm1506_vm0, %v66_v11  ;;  %s77_s24 = sadd.s32 %s1318_s22, %s74_s21  ;;  %s87_s25 = sand.u32 7, %s1493_s15  ;;  %393 = vmatpush.bf16.msra.mxu0 %v1336_v8  ;;  %462 = vmatpush.bf16.msra.mxu2 %v1349_v42  ;;  %v1369_v62 = vld [vmem:[%s1796_s5 + $0x88] sm:$0xff]  ;;  %v1356_v0 = vld [vmem:[%s1796_s5 + $0x20] sm:$0xff] }
  0x14   :  { %407 = vmatpush.bf16.msra.mxu1 %v1344_v9  ;;  %s78_s8 = scalar_lea.vmem %s1792_s1, %s77_s24  ;;  %s1319_s0 = sshll.u32 %s84_s23, 4  ;;  %v1364_v1 = vld [vmem:[%s1796_s5 + $0x60] sm:$0xff]  ;;  %v1383_v5 = vld [vmem:[%s1796_s5 + $0xf8] sm:$0xff]  ;;  %v1374_v6 = vld [vmem:[%s1796_s5 + $0xb0] sm:$0xff] }
  0x15   :  { %v79_v14 = vld [vmem:[%s78_s8] ss:$8 sm:$0x3]  ;;  %s90_s9 = sadd.s32 %s1319_s0, %s87_s25  ;;  %s97_s11 = sshra.s32 %s1495_s16, 3  ;;  %v1362_v7 = vld [vmem:[%s1796_s5 + $0x50] sm:$0xff] }
  0x16   :  { %81 = vst.msk [vmem:[#allocation2 + $0x2] ss:$8 sm:$0x3] %vm1506_vm0, %v79_v14  ;;  %s91_s13 = scalar_lea.vmem %s1792_s1, %s90_s9  ;;  %s100_s18 = sand.u32 7, %s1495_s16  ;;  %577 = vmatpush.bf16.msra.mxu3 %v1357_v60  ;;  %v1368_v2 = vld [vmem:[%s1796_s5 + $0x80] sm:$0xff]  ;;  %v1382_v8 = vld [vmem:[%s1796_s5 + $0xf0] sm:$0xff] }
  0x17   :  { %v92_v15 = vld [vmem:[%s91_s13] ss:$8 sm:$0x3]  ;;  %s1320_s10 = sshll.u32 %s97_s11, 4  ;;  %s110_s19 = sshra.s32 %s1497_s17, 3  ;;  %394 = vmatpush.bf16.msra.mxu0 %v1335_v12  ;;  %463 = vmatpush.bf16.msra.mxu2 %v1348_v43  ;;  %v1378_v43 = vld [vmem:[%s1796_s5 + $0xd0] sm:$0xff] }
  0x18   :  { %408 = vmatpush.bf16.msra.mxu1 %v1343_v13  ;;  %94 = vst.msk [vmem:[#allocation2 + $0x3] ss:$8 sm:$0x3] %vm1506_vm0, %v92_v15  ;;  %s103_s24 = sadd.s32 %s1320_s10, %s100_s18  ;;  %s113_s25 = sand.u32 7, %s1497_s17  ;;  %v1373_v9 = vld [vmem:[%s1796_s5 + $0xa8] sm:$0xff]  ;;  %v1372_v13 = vld [vmem:[%s1796_s5 + $0xa0] sm:$0xff] }
  0x19   :  { %s104_s27 = scalar_lea.vmem %s1792_s1, %s103_s24  ;;  %s1321_s28 = sshll.u32 %s110_s19, 4  ;;  %v1361_v10 = vld [vmem:[%s1796_s5 + $0x48] sm:$0xff]  ;;  %v1360_v14 = vld [vmem:[%s1796_s5 + $0x40] sm:$0xff] }
  0x1a   :  { %v105_v18 = vld [vmem:[%s104_s27] ss:$8 sm:$0x3]  ;;  %s116_s29 = sadd.s32 %s1321_s28, %s113_s25  ;;  %s1013_s14 = sld [smem:[#allocation3 + $0x6]]  ;;  %578 = vmatpush.bf16.msra.mxu3 %v1356_v0 }
  0x1b   :  { %107 = vst.msk [vmem:[#allocation2 + $0x4] ss:$8 sm:$0x3] %vm1506_vm0, %v105_v18  ;;  %s117_s11 = scalar_lea.vmem %s1792_s1, %s116_s29  ;;  %s1016_s17 = sld [smem:[#allocation3 + $0x7]]  ;;  %395 = vmatpush.bf16.msra.mxu0 %v1334_v16  ;;  %615 = vmatpush.bf16.msrb.mxu2 %v1355_v51  ;;  %v1381_v11 = vld [vmem:[%s1796_s5 + $0xe8] sm:$0xff]  ;;  %v1380_v16 = vld [vmem:[%s1796_s5 + $0xe0] sm:$0xff] }
  0x1c   :  { %409 = vmatpush.bf16.msra.mxu1 %v1342_v17  ;;  %v118_v21 = vld [vmem:[%s117_s11] ss:$8 sm:$0x3]  ;;  %s1571_s13 = sld [smem:[#allocation3 + $0x8]] }
  0x1d   :  { %120 = vst.msk [vmem:[#allocation2 + $0x5] ss:$8 sm:$0x3] %vm1506_vm0, %v118_v21  ;;  %s1575_s18 = sld [smem:[#allocation3 + $0x9]] }
  0x1e   :  { %s1577_s10 = sld [smem:[#allocation3 + $0xa]]  ;;  %664 = vmatpush.bf16.msrb.mxu3 %v1363_v4 }
  0x1f   :  { %s1579_s19 = sld [smem:[#allocation3 + $0xb]]  ;;  %396 = vmatpush.bf16.msra.mxu0 %v1333_v19  ;;  %616 = vmatpush.bf16.msrb.mxu2 %v1354_v55  ;;  %v1376_v55 = vld [vmem:[%s1796_s5 + $0xc0] sm:$0xff] }
  0x20   :  { %410 = vmatpush.bf16.msra.mxu1 %v1341_v20  ;;  %s123_s24 = sshra.s32 %s1013_s14, 3  ;;  %s126_s25 = sand.u32 7, %s1013_s14 }
  0x21   :  { %s1322_s26 = sshll.u32 %s123_s24, 4  ;;  %s136_s16 = sshra.s32 %s1016_s17, 3 }
  0x22   :  { %s129_s27 = sadd.s32 %s1322_s26, %s126_s25  ;;  %s139_s28 = sand.u32 7, %s1016_s17  ;;  %665 = vmatpush.bf16.msrb.mxu3 %v1362_v7 }
  0x23   :  { %s130_s8 = scalar_lea.vmem %s1792_s1, %s129_s27  ;;  %s1323_s0 = sshll.u32 %s136_s16, 4  ;;  %397 = vmatpush.bf16.msra.mxu0 %v1332_v22  ;;  %617 = vmatpush.bf16.msrb.mxu2 %v1353_v59 }
  0x24   :  { %411 = vmatpush.bf16.msra.mxu1 %v1340_v23  ;;  %v131_v24 = vld [vmem:[%s130_s8] ss:$8 sm:$0x3]  ;;  %s142_s9 = sadd.s32 %s1323_s0, %s139_s28  ;;  %s149_s2 = sshra.s32 %s1571_s13, 3 }
  0x25   :  { %133 = vst.msk [vmem:[#allocation2 + $0x6] ss:$8 sm:$0x3] %vm1506_vm0, %v131_v24  ;;  %s143_s17 = scalar_lea.vmem %s1792_s1, %s142_s9  ;;  %s152_s15 = sand.u32 7, %s1571_s13 }
  0x26   :  { %v144_v25 = vld [vmem:[%s143_s17] ss:$8 sm:$0x3]  ;;  %s1324_s12 = sshll.u32 %s149_s2, 4  ;;  %s162_s20 = sshra.s32 %s1575_s18, 3  ;;  %666 = vmatpush.bf16.msrb.mxu3 %v1361_v10 }
  0x27   :  { %146 = vst.msk [vmem:[#allocation2 + $0x7] ss:$8 sm:$0x3] %vm1506_vm0, %v144_v25  ;;  %s155_s21 = sadd.s32 %s1324_s12, %s152_s15  ;;  %s165_s22 = sand.u32 7, %s1575_s18  ;;  %714 = vmatpush.bf16.msrb.mxu0 %v1367_v53  ;;  %618 = vmatpush.bf16.msrb.mxu2 %v1352_v63 }
  0x28   :  { %s156_s25 = scalar_lea.vmem %s1792_s1, %s155_s21  ;;  %s1325_s26 = sshll.u32 %s162_s20, 4  ;;  %764 = vmatpush.bf16.msrb.mxu1 %v1371_v54 }
  0x29   :  { %v157_v26 = vld [vmem:[%s156_s25] ss:$8 sm:$0x3]  ;;  %s168_s16 = sadd.s32 %s1325_s26, %s165_s22  ;;  %s175_s27 = sshra.s32 %s1577_s10, 3 }
  0x2a   :  { %159 = vst.msk [vmem:[#allocation2 + $0x10] ss:$8 sm:$0x3] %vm1506_vm0, %v157_v26  ;;  %s169_s29 = scalar_lea.vmem %s1792_s1, %s168_s16  ;;  %s178_s30 = sand.u32 7, %s1577_s10  ;;  %667 = vmatpush.bf16.msrb.mxu3 %v1360_v14 }
  0x2b   :  { %v170_v28 = vld [vmem:[%s169_s29] ss:$8 sm:$0x3]  ;;  %s1326_s18 = sshll.u32 %s175_s27, 4  ;;  %s188_s9 = sshra.s32 %s1579_s19, 3  ;;  %715 = vmatpush.bf16.msrb.mxu0 %v1366_v57 }
  0x2c   :  { %172 = vst.msk [vmem:[#allocation2 + $0x11] ss:$8 sm:$0x3] %vm1506_vm0, %v170_v28  ;;  %s181_s2 = sadd.s32 %s1326_s18, %s178_s30  ;;  %s191_s14 = sand.u32 7, %s1579_s19  ;;  %765 = vmatpush.bf16.msrb.mxu1 %v1370_v58 }
  0x2d   :  { %s182_s15 = scalar_lea.vmem %s1792_s1, %s181_s2  ;;  %s1327_s12 = sshll.u32 %s188_s9, 4 }
  0x2e   :  { %v183_v29 = vld [vmem:[%s182_s15] ss:$8 sm:$0x3]  ;;  %s194_s10 = sadd.s32 %s1327_s12, %s191_s14  ;;  %s1031_s20 = sld [smem:[#allocation3 + $0xc]] }
  0x2f   :  { %185 = vst.msk [vmem:[#allocation2 + $0x12] ss:$8 sm:$0x3] %vm1506_vm0, %v183_v29  ;;  %s195_s23 = scalar_lea.vmem %s1792_s1, %s194_s10  ;;  %s1034_s24 = sld [smem:[#allocation3 + $0xd]]  ;;  %v252_v35 = vld [vmem:[#allocation2] sm:$0xff]  ;;  %v253_v36 = vld [vmem:[#allocation2 + $0x8] sm:$0xff]  ;;  %716 = vmatpush.bf16.msrb.mxu0 %v1365_v61 }
  0x30   :  { %v196_v30 = vld [vmem:[%s195_s23] ss:$8 sm:$0x3]  ;;  %s1037_s25 = sld [smem:[#allocation3 + $0xe]]  ;;  %766 = vmatpush.bf16.msrb.mxu1 %v1369_v62  ;;  %s938_s23 = sshll.u32 %s1798_s7, 4  ;;  %s939_s23 = int_to_ptr.hbm [resolvable:$true] %s938_s23 }
  0x31   :  { %198 = vst.msk [vmem:[#allocation2 + $0x13] ss:$8 sm:$0x3] %vm1506_vm0, %v196_v30  ;;  %s1040_s19 = sld [smem:[#allocation3 + $0xf]] }
  0x33   :  { %717 = vmatpush.bf16.msrb.mxu0 %v1364_v1 }
  0x34   :  { %s201_s26 = sshra.s32 %s1031_s20, 3  ;;  %s204_s16 = sand.u32 7, %s1031_s20  ;;  %767 = vmatpush.bf16.msrb.mxu1 %v1368_v2 }
  0x35   :  { %s1328_s27 = sshll.u32 %s201_s26, 4  ;;  %s214_s13 = sshra.s32 %s1034_s24, 3 }
  0x36   :  { %s207_s28 = sadd.s32 %s1328_s27, %s204_s16  ;;  %s217_s29 = sand.u32 7, %s1034_s24 }
  0x37   :  { %s208_s0 = scalar_lea.vmem %s1792_s1, %s207_s28  ;;  %s1329_s18 = sshll.u32 %s214_s13, 4 }
  0x38   :  { %v209_v31 = vld [vmem:[%s208_s0] ss:$8 sm:$0x3]  ;;  %s220_s9 = sadd.s32 %s1329_s18, %s217_s29  ;;  %s227_s2 = sshra.s32 %s1037_s25, 3 }
  0x39   :  { %211 = vst.msk [vmem:[#allocation2 + $0x14] ss:$8 sm:$0x3] %vm1506_vm0, %v209_v31  ;;  %s221_s17 = scalar_lea.vmem %s1792_s1, %s220_s9  ;;  %s230_s15 = sand.u32 7, %s1037_s25 }
  0x3a   :  { %v222_v32 = vld [vmem:[%s221_s17] ss:$8 sm:$0x3]  ;;  %s1330_s12 = sshll.u32 %s227_s2, 4  ;;  %s240_s10 = sshra.s32 %s1040_s19, 3 }
  0x3b   :  { %224 = vst.msk [vmem:[#allocation2 + $0x15] ss:$8 sm:$0x3] %vm1506_vm0, %v222_v32  ;;  %s233_s20 = sadd.s32 %s1330_s12, %s230_s15  ;;  %s243_s21 = sand.u32 7, %s1040_s19 }
  0x3c   :  { %s234_s24 = scalar_lea.vmem %s1792_s1, %s233_s20  ;;  %s1331_s26 = sshll.u32 %s240_s10, 4 }
  0x3d   :  { %v235_v33 = vld [vmem:[%s234_s24] ss:$8 sm:$0x3]  ;;  %s246_s16 = sadd.s32 %s1331_s26, %s243_s21  ;;  %s1433_s10 = smov [#allocation6]  }
  0x3e   :  { %237 = vst.msk [vmem:[#allocation2 + $0x16] ss:$8 sm:$0x3] %vm1506_vm0, %v235_v33  ;;  %s247_s13 = scalar_lea.vmem %s1792_s1, %s246_s16  ;;  %s936_s20 = sshll.u32 %s1433_s10, 4  ;;  %s937_s20 = int_to_ptr.vmem [resolvable:$true] %s936_s20 }
  0x3f   :  { %v248_v34 = vld [vmem:[%s247_s13] ss:$8 sm:$0x3] }
  0x40   :  { %250 = vst.msk [vmem:[#allocation2 + $0x17] ss:$8 sm:$0x3] %vm1506_vm0, %v248_v34 }
  0x47   :  { %v254_v37 = vld [vmem:[#allocation2 + $0x10] sm:$0xff]  ;;  %v255_v38 = vld [vmem:[#allocation2 + $0x18] sm:$0xff] }
  0x48   :  { %v256_v39 = vpack.c.bf16 %v254_v37, %v252_v35  ;;  %v257_v40 = vpack.c.bf16 %v255_v38, %v253_v36  ;;  %v1379_v38 = vld [vmem:[%s1796_s5 + $0xd8] sm:$0xff] }
  0x4a   :  { %398 = vmatmul.bf16.vlgmr.msra.gmra.mxu0 %v256_v39  ;;  %412 = vmatmul.bf16.vlgmr.msra.gmra.mxu1 %v257_v40 }
  0x4b   :  { %914 = vmatpush.bf16.msra.mxu0 %v1383_v5 }
  0x4f   :  { %915 = vmatpush.bf16.msra.mxu0 %v1382_v8 }
  0x53   :  { %916 = vmatpush.bf16.msra.mxu0 %v1381_v11 }
  0x57   :  { %917 = vmatpush.bf16.msra.mxu0 %v1380_v16 }
  0xc7   :  { %v399_v45 = vpop.f32.mrf.mxu0  ;;  %v413_v47 = vpop.f32.mrf.mxu1 }
  0xc8   :  { %v400_v46 = vadd.f32 %v1386_v44, %v399_v45 }
  0xca   :  { %v414_v48 = vadd.f32 %v413_v47, %v400_v46  ;;  %v1377_v47 = vld [vmem:[%s1796_s5 + $0xc8] sm:$0xff] }
  0xcc   :  { %1388 = vtanh.f32 %v414_v48 }
  0xcf   :  { %v401_v12 = vpop.f32.mrf.mxu0  ;;  %v415_v17 = vpop.f32.mrf.mxu1 }
  0xd0   :  { %v402_v15 = vadd.f32 %v1386_v44, %v401_v12 }
  0xd2   :  { %v1660_v49 = vpop.eup %1388  ;;  %v416_v18 = vadd.f32 %v415_v17, %v402_v15 }
  0xd3   :  { %v419_v50 = vpack.c.bf16 %v1660_v49, %v1660_v49  ;;  %v472_v27 = vrot.slane %v1660_v49, 1  ;;  %v474_v28 = vrot.slane %v1660_v49, 3  ;;  %v475_v29 = vrot.slane %v1660_v49, 4 }
  0xd4   :  { %v476_v48 = vrot.slane %v1660_v49, 5  ;;  %v473_v53 = vrot.slane %v1660_v49, 2  ;;  %v478_v54 = vrot.slane %v1660_v49, 7  ;;  %v477_v63 = vrot.slane %v1660_v49, 6 }
  0xd5   :  { %1123 = vmatmul.msk.bf16.vlgmr.msra.gmra.mxu2 %vm452_vm1, %v419_v50 }
  0xd6   :  { %814 = vmatpush.bf16.msra.mxu2 %v1375_v3 }
  0xda   :  { %815 = vmatpush.bf16.msra.mxu2 %v1374_v6 }
  0xde   :  { %816 = vmatpush.bf16.msra.mxu2 %v1373_v9 }
  0xe2   :  { %817 = vmatpush.bf16.msra.mxu2 %v1372_v13 }
 0x158   :  { %v465_v19 = vpop.f32.mrf.mxu2 }
 0x159   :  { %v469_v20 = vadd.f32 %v465_v19, %v416_v18 }
 0x15b   :  { %1390 = vtanh.f32 %v469_v20 }
 0x160   :  { %v467_v21 = vpop.f32.mrf.mxu2 }
 0x161   :  { %v1391_v22 = vpop.eup %1390 }
 0x162   :  { %v494_v23 = vperm.slane %v1391_v22, 0  ;;  %v487_v24 = vrot.slane %v1391_v22, 1  ;;  %v489_v25 = vrot.slane %v1391_v22, 3  ;;  %v490_v26 = vrot.slane %v1391_v22, 4 }
 0x163   :  { %v491_v42 = vrot.slane %v1391_v22, 5  ;;  %v488_v44 = vrot.slane %v1391_v22, 2  ;;  %v493_v45 = vrot.slane %v1391_v22, 7  ;;  %v492_v61 = vrot.slane %v1391_v22, 6  ;;  %v1387_v22 = vld [vmem:[%s1797_s6] ss:$0 sm:$0xff] }
 0x164   :  { %v511_v30 = vsel %vm510_vm2, %v1660_v49, %v494_v23  ;;  %v495_v31 = vperm.slane %v487_v24, 0  ;;  %v497_v32 = vperm.slane %v489_v25, 0  ;;  %v498_v33 = vperm.slane %v490_v26, 0 }
 0x165   :  { %v519_v34 = vpack.c.bf16 %v511_v30, %v511_v30  ;;  %v499_v46 = vperm.slane %v491_v42, 0  ;;  %v496_v50 = vperm.slane %v488_v44, 0  ;;  %v501_v51 = vperm.slane %v493_v45, 0 }
 0x166   :  { %v512_v35 = vsel %vm510_vm2, %v472_v27, %v495_v31  ;;  %v514_v36 = vsel %vm510_vm2, %v474_v28, %v497_v32  ;;  %v515_v37 = vsel %vm510_vm2, %v475_v29, %v498_v33  ;;  %v500_v62 = vperm.slane %v492_v61, 0 }
 0x167   :  { %1165 = vmatmul.msk.bf16.vlgmr.msrb.gmra.mxu2 %vm452_vm1, %v519_v34  ;;  %v520_v39 = vpack.c.bf16 %v512_v35, %v512_v35  ;;  %v522_v40 = vpack.c.bf16 %v514_v36, %v514_v36  ;;  %v523_v41 = vpack.c.bf16 %v515_v37, %v515_v37  ;;  %v516_v52 = vsel %vm510_vm2, %v476_v48, %v499_v46 }
 0x168   :  { %v513_v56 = vsel %vm510_vm2, %v473_v53, %v496_v50  ;;  %v518_v57 = vsel %vm510_vm2, %v478_v54, %v501_v51  ;;  %v524_v58 = vpack.c.bf16 %v516_v52, %v516_v52  ;;  %v517_v0 = vsel %vm510_vm2, %v477_v63, %v500_v62 }
 0x169   :  { %1148 = vmatmul.msk.bf16.vlgmr.msra.gmra.mxu3 %vm452_vm1, %v520_v39  ;;  %1215 = vmatmul.msk.bf16.vlgmr.msrb.gmra.mxu0 %vm452_vm1, %v522_v40  ;;  %v521_v59 = vpack.c.bf16 %v513_v56, %v513_v56  ;;  %v526_v60 = vpack.c.bf16 %v518_v57, %v518_v57  ;;  %v525_v1 = vpack.c.bf16 %v517_v0, %v517_v0 }
 0x16a   :  { %1240 = vmatmul.msk.bf16.vlgmr.msrb.gmra.mxu1 %vm452_vm1, %v523_v41  ;;  %864 = vmatpush.bf16.msra.mxu3 %v1379_v38 }
 0x16e   :  { %865 = vmatpush.bf16.msra.mxu3 %v1378_v43 }
 0x172   :  { %866 = vmatpush.bf16.msra.mxu3 %v1377_v47 }
 0x176   :  { %867 = vmatpush.bf16.msra.mxu3 %v1376_v55 }
 0x177   :  { %1265 = vmatmul.msk.bf16.vlgmr.msra.gmra.mxu2 %vm452_vm1, %v524_v58 }
 0x179   :  { %1190 = vmatmul.msk.bf16.vlgmr.msrb.gmra.mxu3 %vm452_vm1, %v521_v59  ;;  %1315 = vmatmul.msk.bf16.vlgmr.msra.gmra.mxu0 %vm452_vm1, %v526_v60 }
 0x189   :  { %1290 = vmatmul.msk.bf16.vlgmr.msra.gmra.mxu3 %vm452_vm1, %v525_v1 }
 0x1e6   :  { %v719_v2 = vpop.f32.mrf.mxu0 }
 0x1e7   :  { %v769_v3 = vpop.f32.mrf.mxu1 }
 0x1ea   :  { %v620_v4 = vpop.f32.mrf.mxu2 }
 0x1ec   :  { %v580_v5 = vpop.f32.mrf.mxu3 }
 0x1ed   :  { %v621_v13 = vadd.f32 %v620_v4, %v580_v5 }
 0x1ee   :  { %v721_v6 = vpop.f32.mrf.mxu0 }
 0x1ef   :  { %v771_v7 = vpop.f32.mrf.mxu1 }
 0x1f2   :  { %v622_v8 = vpop.f32.mrf.mxu2 }
 0x1f4   :  { %v582_v9 = vpop.f32.mrf.mxu3 }
 0x1f6   :  { %v919_v10 = vpop.f32.mrf.mxu0 }
 0x1fa   :  { %v819_v11 = vpop.f32.mrf.mxu2 }
 0x1fc   :  { %v669_v12 = vpop.f32.mrf.mxu3 }
 0x1fd   :  { %v673_v15 = vadd.f32 %v669_v12, %v621_v13 }
 0x1fe   :  { %v921_v14 = vpop.f32.mrf.mxu0 }
 0x1ff   :  { %v723_v16 = vadd.f32 %v719_v2, %v673_v15 }
 0x201   :  { %v773_v18 = vadd.f32 %v769_v3, %v723_v16 }
 0x202   :  { %v821_v49 = vpop.f32.mrf.mxu2 }
 0x203   :  { %v823_v19 = vadd.f32 %v819_v11, %v773_v18 }
 0x204   :  { %v671_v17 = vpop.f32.mrf.mxu3 }
 0x20c   :  { %v869_v20 = vpop.f32.mrf.mxu3 }
 0x20d   :  { %v873_v21 = vadd.f32 %v869_v20, %v823_v19 }
 0x20f   :  { %v923_v23 = vadd.f32 %v919_v10, %v873_v21 }
 0x211   :  { %v928_v24 = vadd.f32 %v1387_v22, %v923_v23 }
 0x213   :  { %930 = vst.msk [vmem:[#allocation6] sm:$0x3] %vm929_vm3, %v928_v24 }
 0x214   :  { %v871_v25 = vpop.f32.mrf.mxu3  ;;  %941 = dma.vmem_to_hbm [thread:$0]  %s937_s20, 32, %s939_s23, [#allocation4]  }
 0x215   :  { %1430 = dma.done.wait [#allocation4], 32  }
 0x216   :  { %1431 = vsyncadd [#allocation4], 4294967264 }
 0x217   :  { %946 = vsyncpa [#allocation4], 1 }
 0x218   :  { %947 = vsyncpa [#allocation5], 1 }

</bundles_post_ra>
